<compile_context>
chip_gen: v6e
topology: v6e:2x2x1
jax: 0.10.0
libtpu: 0.0.40
codegen_flags: <defaults>
</compile_context>

<pallas_src>
import functools
import math

import jax
import jax.numpy as jnp
from jax.experimental import pallas as pl
from jax.experimental.pallas import tpu as pltpu

POS_EMBED_FREQ_INV = 2000.0


def make_inv_freq(channels: int) -> jnp.ndarray:
    channels = int(math.ceil(channels / 2) * 2)
    k = jnp.arange(0, channels, 2, dtype=jnp.float32)
    return 1.0 / (POS_EMBED_FREQ_INV ** (k / channels))


def _vmem_capacity_bytes() -> int:
    """Physical VMEM of the local chip; conservative (v7x-sized) fallback."""
    try:
        cap = getattr(pltpu.get_tpu_info(), "vmem_capacity_bytes", None)
        if cap:
            return int(cap)
    except Exception:
        pass
    return 64 * 1024 * 1024


def _sinpos_kernel(x_ref, expand_ref, fp_ref, out_ref, *, fuse: int):
    # x_ref:      (TM, fuse)  f32   fused positions for this row tile
    # expand_ref: (fuse, L)   f32   0/1 one-hot expansion matrix (L = fuse * W)
    # fp_ref:     (2, L)      f32   row 0: inv_freq per lane, row 1: phase (0 or pi/2)
    # out_ref:    (TM, L)           lane-dense output tile
    fp = fp_ref[...]
    freq = fp[0:1, :]                 # (1, L)
    phase = fp[1:2, :]                # (1, L)
    x = x_ref[...]                    # (TM, fuse)
    if fuse > 1:
        # Replicate each position across its W output lanes via the MXU.  The matrix
        # is exactly 0/1, so with HIGHEST precision this reproduces x bit-exactly.
        x_lanes = jnp.dot(x, expand_ref[...],
                          preferred_element_type=jnp.float32,
                          precision=jax.lax.Precision.HIGHEST)   # (TM, L)
    else:
        x_lanes = x                   # (TM, 1) broadcasts against (1, L)
    angle = x_lanes * freq + phase
    # cos(t) == sin(t + pi/2): one transcendental per element, single full-tile store.
    out_ref[...] = jnp.sin(angle).astype(out_ref.dtype)


def sinusoidal_positional_encoding(
    x: jnp.ndarray,
    channels: int,
    *,
    out_dtype=jnp.float32,            # bf16 halves HBM writeback; use where downstream allows
    max_rows_per_tile=None,
) -> jnp.ndarray:
    """x: any shape (each element is a position) -> (*x.shape, 2 * ceil(channels / 2))."""
    x = jnp.asarray(x, jnp.float32)
    inv_freq = make_inv_freq(channels)
    J = int(inv_freq.shape[0])
    W = 2 * J                                    # per-position output width
    orig_shape = x.shape
    N = int(x.size)
    out_itemsize = int(jnp.dtype(out_dtype).itemsize)
    if N == 0:
        return jnp.zeros((*orig_shape, W), out_dtype)

    # --- lane-fusion factor: pack `fuse` positions per kernel row so that the
    # output block's last dim L = fuse * W is a multiple of 128 (lane-dense). ---
    fuse = 1
    if W % 128 != 0:
        fuse = 128 // math.gcd(W, 128)
        while fuse * W < 256:
            fuse *= 2
    L = fuse * W

    # --- pad the flattened positions to a multiple of `fuse` (no lane-sparse path) ---
    R = int(pl.cdiv(N, fuse))                    # kernel rows
    N_pad = R * fuse
    x_flat = x.reshape(-1)
    if N_pad != N:
        x_flat = jnp.pad(x_flat, (0, N_pad - N))
    x_rows = x_flat.reshape(R, fuse)             # free, row-major reshape

    # --- chip-aware VMEM budgeting (output double-buffer + f32 compute temporaries) ---
    vmem_cap = _vmem_capacity_bytes()
    if vmem_cap >= 96 * 1024 * 1024:             # v5e / v6e: 128 MiB physical VMEM
        vmem_budget = 56 * 1024 * 1024
        vmem_limit = 64 * 1024 * 1024
    else:                                        # v7x: 64 MiB per TC (or unknown chip)
        vmem_budget = 24 * 1024 * 1024
        vmem_limit = 40 * 1024 * 1024
    # per row: 2x double-buffered output (out_dtype) + ~2 f32 temporaries (MXU result, angle)
    bytes_per_row = L * (2 * out_itemsize + 2 * 4)
    rows_per_tile = max(1, vmem_budget // bytes_per_row)
    if max_rows_per_tile is not None:
        rows_per_tile = min(rows_per_tile, int(max_rows_per_tile))
    tm = min(R, rows_per_tile)
    if R >= 4 * 8:
        # keep >= 4 grid steps so "parallel" can use both v7x TCs and overlap writeback
        tm = min(tm, int(pl.cdiv(R, 4)))
    if tm < R:
        tm = max(8, (tm // 8) * 8)               # sublane-aligned tiles when actually tiling
    grid = (int(pl.cdiv(R, tm)),)

    # --- tiny per-lane tables (constant across the grid) ---
    lane = jnp.arange(L, dtype=jnp.int32)
    c = lane % W                                 # channel index within a position
    freq_row = inv_freq[c % J]                               # (L,)
    phase_row = jnp.where(c >= J, jnp.float32(math.pi / 2.0), jnp.float32(0.0))
    fp = jnp.stack([freq_row, phase_row], axis=0)            # (2, L)
    expand = (jnp.arange(fuse, dtype=jnp.int32)[:, None] == (lane // W)[None, :])
    expand = expand.astype(jnp.float32)                      # (fuse, L), exactly 0/1

    kernel = functools.partial(_sinpos_kernel, fuse=fuse)
    out = pl.pallas_call(
        kernel,
        out_shape=jax.ShapeDtypeStruct((R, L), out_dtype),
        grid=grid,
        in_specs=[
            pl.BlockSpec((tm, fuse), lambda i: (i, 0)),
            pl.BlockSpec((fuse, L), lambda i: (0, 0)),
            pl.BlockSpec((2, L), lambda i: (0, 0)),
        ],
        out_specs=pl.BlockSpec((tm, L), lambda i: (i, 0)),
        compiler_params=pltpu.CompilerParams(
            dimension_semantics=("parallel",),   # rows are independent; use both TCs on v7x
            vmem_limit_bytes=vmem_limit,
        ),
        cost_estimate=pl.CostEstimate(
            flops=2 * N_pad * W,
            transcendentals=N_pad * W,
            bytes_accessed=4 * N_pad + out_itemsize * N_pad * W + 4 * (fuse * L + 2 * L),
        ),
    )(x_rows, expand, fp)

    # (R, L) and (N_pad, W) share the same row-major byte layout -> free reshape; then
    # drop the (at most fuse-1) padded positions.
    out = out.reshape(N_pad, W)
    if N_pad != N:
        out = out[:N]
    return out.reshape(*orig_shape, W)


def _reference(x: jnp.ndarray, channels: int) -> jnp.ndarray:
    inv_freq = make_inv_freq(channels)
    sin_inp = jnp.einsum("...i,j->...ij", x.astype(jnp.float32), inv_freq)
    return jnp.concatenate([jnp.sin(sin_inp), jnp.cos(sin_inp)], axis=-1)


if __name__ == "__main__":
    key = jax.random.PRNGKey(0)
    B, S, CHANNELS = 2, 8, 32  # -> J = 16, output (2, 8, 32)
    x = jax.random.uniform(key, (B, S), dtype=jnp.float32) * 100.0  # position-like values

    out = jax.block_until_ready(sinusoidal_positional_encoding(x, CHANNELS))
    ref = _reference(x, CHANNELS)
    assert out.shape == ref.shape == (B, S, CHANNELS)
    assert jnp.allclose(out, ref, atol=2e-5, rtol=1e-5), float(jnp.max(jnp.abs(out - ref)))

    # Exercise the pad-to-fuse path (N % fuse != 0) and a multi-step ragged row grid.
    x2 = jax.random.normal(jax.random.PRNGKey(1), (3, 37), dtype=jnp.float32) * 10.0
    out2 = jax.block_until_ready(
        sinusoidal_positional_encoding(x2, CHANNELS, max_rows_per_tile=8))
    ref2 = _reference(x2, CHANNELS)
    assert out2.shape == ref2.shape == (3, 37, CHANNELS)
    assert jnp.allclose(out2, ref2, atol=2e-5, rtol=1e-5), float(jnp.max(jnp.abs(out2 - ref2)))

    # bf16 output path (the main perf lever when downstream tolerates it).
    out3 = jax.block_until_ready(
        sinusoidal_positional_encoding(x2, CHANNELS, out_dtype=jnp.bfloat16))
    assert out3.shape == ref2.shape and out3.dtype == jnp.bfloat16
    assert jnp.allclose(out3.astype(jnp.float32), ref2, atol=1.5e-2, rtol=1e-2)

    print("KERNEL_OK")
</pallas_src>

<mosaic_0001>
module attributes {stable_mosaic.version = 11 : i64} {
  func.func @_sinpos_kernel(%arg0: i32, %arg1: memref<2x8xf32, #tpu.memory_space<vmem>>, %arg2: memref<8x256xf32, #tpu.memory_space<vmem>>, %arg3: memref<2x256xf32, #tpu.memory_space<vmem>>, %arg4: memref<2x256xf32, #tpu.memory_space<vmem>>) attributes {dimension_semantics = [#tpu.dimension_semantics<parallel>], iteration_bounds = array<i64: 1>, scalar_prefetch = 0 : i64, scratch_operands = 0 : i64, tpu.core_type = #tpu.core_type<tc>, window_params = [{transform_indices = @transform_0, window_bounds = array<i64: 2, 8>}, {pipeline_mode = #tpu.pipeline_mode<synchronous>, transform_indices = @transform_1, window_bounds = array<i64: 8, 256>}, {pipeline_mode = #tpu.pipeline_mode<synchronous>, transform_indices = @transform_2, window_bounds = array<i64: 2, 256>}, {transform_indices = @transform_3, window_bounds = array<i64: 2, 256>}]} {
    %c0 = arith.constant 0 : index
    %c0_0 = arith.constant 0 : index
    %0 = vector.load %arg3[%c0, %c0_0] : memref<2x256xf32, #tpu.memory_space<vmem>>, vector<2x256xf32>
    %1 = vector.extract_strided_slice %0 {offsets = [0, 0], sizes = [1, 256], strides = [1, 1]} : vector<2x256xf32> to vector<1x256xf32>
    %2 = vector.extract_strided_slice %0 {offsets = [1, 0], sizes = [1, 256], strides = [1, 1]} : vector<2x256xf32> to vector<1x256xf32>
    %c0_1 = arith.constant 0 : index
    %c0_2 = arith.constant 0 : index
    %3 = vector.load %arg1[%c0_1, %c0_2] : memref<2x8xf32, #tpu.memory_space<vmem>>, vector<2x8xf32>
    %c0_3 = arith.constant 0 : index
    %c0_4 = arith.constant 0 : index
    %4 = vector.load %arg2[%c0_3, %c0_4] : memref<8x256xf32, #tpu.memory_space<vmem>>, vector<8x256xf32>
    %cst = arith.constant dense<0.000000e+00> : vector<2x256xf32>
    %5 = tpu.matmul %3, %4, %cst {dimension_numbers = #tpu.dot_dimension_numbers<[1], [0], [0], [1], [0, 0, 1, 1], [], []>, precision = #tpu.contract_precision<fp32>} : vector<2x8xf32>, vector<8x256xf32>, vector<2x256xf32> -> vector<2x256xf32>
    %6 = vector.broadcast %1 : vector<1x256xf32> to vector<2x256xf32>
    %7 = arith.mulf %5, %6 : vector<2x256xf32>
    %8 = vector.broadcast %2 : vector<1x256xf32> to vector<2x256xf32>
    %9 = arith.addf %7, %8 : vector<2x256xf32>
    %10 = math.sin %9 : vector<2x256xf32>
    %c0_5 = arith.constant 0 : index
    %c0_6 = arith.constant 0 : index
    %11 = vector.load %arg4[%c0_5, %c0_6] : memref<2x256xf32, #tpu.memory_space<vmem>>, vector<2x256xf32>
    tpu.vector_store %arg4[%c0_5, %c0_6], %10 {strides = array<i32>} : memref<2x256xf32, #tpu.memory_space<vmem>>, vector<2x256xf32>,
    return
  }
  func.func @transform_0(%arg0: i32) -> (i32, i32) {
    %c0_i32 = arith.constant 0 : i32
    %c0_i32_0 = arith.constant 0 : i32
    return %arg0, %c0_i32 : i32, i32
  }
  func.func @transform_1(%arg0: i32) -> (i32, i32) {
    %c0_i32 = arith.constant 0 : i32
    %c0_i32_0 = arith.constant 0 : i32
    %c0_i32_1 = arith.constant 0 : i32
    return %c0_i32, %c0_i32_0 : i32, i32
  }
  func.func @transform_2(%arg0: i32) -> (i32, i32) {
    %c0_i32 = arith.constant 0 : i32
    %c0_i32_0 = arith.constant 0 : i32
    %c0_i32_1 = arith.constant 0 : i32
    return %c0_i32, %c0_i32_0 : i32, i32
  }
  func.func @transform_3(%arg0: i32) -> (i32, i32) {
    %c0_i32 = arith.constant 0 : i32
    %c0_i32_0 = arith.constant 0 : i32
    return %arg0, %c0_i32 : i32, i32
  }
}

</mosaic_0001>

<bundles_post_ra>
// kernel: tpu_custom_call.1
= control target key start
LH: loop header
LB: loop body
LE: loop exit
PB: predicated region body
PF: predicated region fallthrough
CT: control target
= control target key end

     0   :  { %8 = vsyncpa [#allocation3], 0  ;;  %s1054_s0 = inlined_call_operand.hbm [shape: f32[2,8], index: 0, kind: input, shape index: {}]   ;;  %s1055_s1 = inlined_call_operand.hbm [shape: f32[8,256], index: 1, kind: input, shape index: {}]   ;;  %s1056_s2 = inlined_call_operand.hbm [shape: f32[2,256], index: 2, kind: input, shape index: {}]   ;;  %s1057_s3 = inlined_call_operand.hbm [shape: f32[2,256], index: 3, kind: output, shape index: {}]  }
   0x1   :  { %9 = vsyncpa [#allocation6], 0 }
   0x2   :  { %10 = vsyncpa [#allocation4], 0  ;;  %s922_s12 = smov [#allocation5]   ;;  %s923_s14 = smov [#allocation2]  }
   0x3   :  { %s27_s13 = sshll.u32 %s922_s12, 4  ;;  %s17_s15 = sshll.u32 %s923_s14, 4  ;;  %s28_s13 = int_to_ptr.vmem [resolvable:$true] %s27_s13  ;;  %s18_s15 = int_to_ptr.vmem [resolvable:$true] %s17_s15 }
   0x4   :  { %s844_s16 = scalar_lea.vmem %s28_s13, 256  ;;  %p849_p1 = scmp.lt.s32.totalorder %s28_s13, %s28_s13 }
   0x5   :  { %p845_p0 = scmp.ne.s32.totalorder %s28_s13, %s844_s16  ;;  %p850_p2 = scmp.lt.s32.totalorder %s844_s16, %s844_s16 }
   0x7   :  { %p851_p3 = por %p850_p2, %p849_p1 }
   0x9   :  { %p852_p4 = pnand %p851_p3, %p845_p0 }
   0xb   :  { %855 = shalt.err (!%p852_p4)
}
   0xc   :  { %30 = dma.hbm_to_vmem [thread:$0]  %s1055_s1, 256, %s28_s13, [#allocation6]  }
   0xd   :  { %s864_s19 = scalar_lea.vmem %s18_s15, 32  ;;  %p869_p6 = scmp.lt.s32.totalorder %s18_s15, %s18_s15 }
   0xe   :  { %p865_p5 = scmp.ne.s32.totalorder %s18_s15, %s864_s19  ;;  %p870_p7 = scmp.lt.s32.totalorder %s864_s19, %s864_s19 }
  0x10   :  { %p871_p8 = por %p870_p7, %p869_p6 }
  0x12   :  { %p872_p9 = pnand %p871_p8, %p865_p5 }
  0x14   :  { %875 = shalt.err (!%p872_p9)
}
  0x15   :  { %20 = dma.hbm_to_vmem [thread:$0]  %s1054_s0, 32, %s18_s15, [#allocation3]  }
  0x16   :  { %s924_s22 = smov [#allocation7]  }
  0x17   :  { %s37_s23 = sshll.u32 %s924_s22, 4  ;;  %s38_s23 = int_to_ptr.vmem [resolvable:$true] %s37_s23 }
  0x18   :  { %s884_s24 = scalar_lea.vmem %s38_s23, 64  ;;  %p889_p11 = scmp.lt.s32.totalorder %s38_s23, %s38_s23 }
  0x19   :  { %p885_p10 = scmp.ne.s32.totalorder %s38_s23, %s884_s24  ;;  %p890_p12 = scmp.lt.s32.totalorder %s884_s24, %s884_s24 }
  0x1b   :  { %p891_p13 = por %p890_p12, %p889_p11 }
  0x1d   :  { %p892_p0 = pnand %p891_p13, %p885_p10 }
  0x1f   :  { %895 = shalt.err (!%p892_p0)
}
  0x20   :  { %40 = dma.hbm_to_vmem [thread:$0]  %s1056_s2, 64, %s38_s23, [#allocation6]  }
  0x21   :  { %916 = dma.done.wait [#allocation3], 32  }
  0x22   :  { %917 = vsyncadd [#allocation3], 4294967264 }
  0x23   :  { %918 = dma.done.wait [#allocation6], 320  }
  0x24   :  { %919 = vsyncadd [#allocation6], 4294966976  ;;  %v925_v0 = vmov 0.0   ;;  %vm54_vm0 = vcmask 64512   ;;  %v53_v1 = vld [vmem:[#allocation5 + $0x8] sm:$0xff]  ;;  %v52_v2 = vld [vmem:[#allocation5] sm:$0xff]  ;;  %v524_v20 = vlaneseq }
  0x25   :  { %124 = vmatprep.mubr.f32.mxu0 %v925_v0  ;;  %210 = vmatprep.mubr.f32.mxu1 %v925_v0  ;;  %v51_v3 = vld [vmem:[#allocation2] sm:$0x3]  ;;  %v88_v4 = vand.u32 4294901760, %v53_v1  ;;  %v90_v5 = vand.u32 4294901760, %v52_v2  ;;  %v50_v27 = vld [vmem:[#allocation7] sm:$0xf] }
  0x26   :  { %v56_v6 = vsel %vm54_vm0, %v51_v3, 0  ;;  %v525_v21 = vshrl.u32 %v524_v20, 7  ;;  %s932_s0 = smov [#allocation8]  }
  0x27   :  { %v125_v7 = vand.u32 4294901760, %v56_v6  ;;  %89 = vmatprep.subr.mxu0 %v88_v4  ;;  %v167_v8 = vsub.f32 %v53_v1, %v88_v4  ;;  %v173_v9 = vsub.f32 %v52_v2, %v90_v5  ;;  %s790_s2 = sshll.u32 %s932_s0, 4  ;;  %s791_s2 = int_to_ptr.vmem [resolvable:$true] %s790_s2 }
  0x28   :  { %91 = vmatpush1.msra.mxu0 %v90_v5  ;;  %v526_v24 = vsub.s32 0, %v525_v21  ;;  %v546_v29 = vsub.s32 1, %v525_v21  ;;  %v530_v30 = vsub.s32 2, %v525_v21  ;;  %v550_v36 = vsub.s32 3, %v525_v21  ;;  %s896_s26 = scalar_lea.vmem %s791_s2, 64  ;;  %p901_p2 = scmp.lt.s32.totalorder %s791_s2, %s791_s2 }
  0x29   :  { %v126_v10 = vsub.f32 %v56_v6, %v125_v7  ;;  %v168_v11 = vand.u32 4294901760, %v167_v8  ;;  %250 = vmatprep.subr.mxu0 %v167_v8  ;;  %v174_v12 = vand.u32 4294901760, %v173_v9  ;;  %p897_p1 = scmp.ne.s32.totalorder %s791_s2, %s896_s26  ;;  %p902_p3 = scmp.lt.s32.totalorder %s896_s26, %s896_s26 }
  0x2a   :  { %v527_v35 = vrot.slane %v50_v27, %v526_v24  ;;  %v547_v41 = vrot.slane %v50_v27, %v546_v29  ;;  %v531_v42 = vrot.slane %v50_v27, %v530_v30  ;;  %v551_v48 = vrot.slane %v50_v27, %v550_v36 }
  0x2b   :  { %v127_v13 = vand.u32 4294901760, %v126_v10  ;;  %v169_v14 = vsub.f32 %v167_v8, %v168_v11  ;;  %v175_v15 = vsub.f32 %v173_v9, %v174_v12  ;;  %v930_v27 = vmov 2475754826   ;;  %p903_p4 = por %p902_p3, %p901_p2 }
  0x2c   :  { %v537_v47 = vrot.slane %v527_v35, %v526_v24  ;;  %v557_v51 = vrot.slane %v547_v41, %v546_v29  ;;  %v541_v54 = vrot.slane %v531_v42, %v526_v24  ;;  %v561_v57 = vrot.slane %v551_v48, %v546_v29 }
  0x2d   :  { %v128_v16 = vsub.f32 %v126_v10, %v127_v13  ;;  %v170_v17 = vand.u32 4294901760, %v169_v14  ;;  %v176_v18 = vand.u32 4294901760, %v175_v15  ;;  %v931_v36 = vmov 2131351028   ;;  %p904_p5 = pnand %p903_p4, %p897_p1 }
  0x2f   :  { %v129_v19 = vand.u32 4294901760, %v128_v16  ;;  %171 = vmatprep.subr.mxu1 %v170_v17  ;;  %v926_v17 = vmov 2102212464  }
  0x30   :  { %177 = vmatpush1.msra.mxu1 %v176_v18 }
  0x31   :  { %130 = vmatmul.mubr.f32.vlgmr.msra.gmra.mxu0 %v129_v19  ;;  %212 = vmatmul.mubr.f32.vlgmr.msra.gmra.mxu1 %v125_v7  ;;  %v927_v19 = vmov 920167782  }
  0x32   :  { %253 = vmatpush1.msra.mxu0 %v173_v9  ;;  %326 = vmatprep.subr.mxu1 %v88_v4 }
  0x33   :  { %286 = vmatprep.mubr.f32.mxu0 %v925_v0  ;;  %328 = vmatpush1.msra.mxu1 %v90_v5 }
  0x34   :  { %404 = vmatprep.subr.mxu0 %v168_v11  ;;  %361 = vmatprep.mubr.f32.mxu1 %v925_v0 }
  0x35   :  { %289 = vmatmul.mubr.f32.vlgmr.msra.gmra.mxu0 %v126_v10  ;;  %365 = vmatmul.mubr.f32.vlgmr.msra.gmra.mxu1 %v127_v13 }
  0x36   :  { %408 = vmatpush1.msra.mxu0 %v174_v12  ;;  %480 = vmatprep.subr.mxu1 %v88_v4 }
  0x37   :  { %441 = vmatprep.mubr.f32.mxu0 %v925_v0  ;;  %482 = vmatpush1.msra.mxu1 %v90_v5 }
  0x38   :  { %515 = vmatprep.mubr.f32.mxu1 %v925_v0 }
  0x39   :  { %443 = vmatmul.mubr.f32.vlgmr.msra.gmra.mxu0 %v125_v7  ;;  %517 = vmatmul.mubr.f32.vlgmr.msra.gmra.mxu1 %v125_v7 }
  0xf1   :  { %v131_v22 = vpop.f32.mrf.mxu0  ;;  %v213_v23 = vpop.f32.mrf.mxu1 }
  0xf2   :  { %v214_v25 = vadd.f32 %v213_v23, %v131_v22  ;;  %v928_v23 = vmov 1326507024  }
  0xf3   :  { %v133_v26 = vpop.f32.mrf.mxu0  ;;  %v215_v28 = vpop.f32.mrf.mxu1 }
  0xf4   :  { %v216_v31 = vadd.f32 %v215_v28, %v133_v26 }
  0xf5   :  { %v290_v32 = vpop.f32.mrf.mxu0  ;;  %v366_v34 = vpop.f32.mrf.mxu1 }
  0xf6   :  { %v291_v33 = vadd.f32 %v290_v32, %v214_v25  ;;  %v929_v25 = vmov 683565275  }
  0xf7   :  { %v292_v37 = vpop.f32.mrf.mxu0  ;;  %v368_v40 = vpop.f32.mrf.mxu1 }
  0xf8   :  { %v367_v38 = vadd.f32 %v366_v34, %v291_v33  ;;  %v293_v39 = vadd.f32 %v292_v37, %v216_v31 }
  0xf9   :  { %v444_v43 = vpop.f32.mrf.mxu0  ;;  %v518_v46 = vpop.f32.mrf.mxu1 }
  0xfa   :  { %v369_v44 = vadd.f32 %v368_v40, %v293_v39  ;;  %v445_v45 = vadd.f32 %v444_v43, %v367_v38 }
  0xfb   :  { %v446_v49 = vpop.f32.mrf.mxu0  ;;  %v520_v53 = vpop.f32.mrf.mxu1 }
  0xfc   :  { %v519_v50 = vadd.f32 %v518_v46, %v445_v45  ;;  %v447_v52 = vadd.f32 %v446_v49, %v369_v44 }
  0xfe   :  { %v542_v55 = vmul.f32 %v537_v47, %v519_v50  ;;  %v521_v56 = vadd.f32 %v520_v53, %v447_v52 }
 0x100   :  { %v962_v58 = vadd.f32 %v557_v51, %v542_v55  ;;  %v543_v59 = vmul.f32 %v541_v54, %v521_v56 }
 0x102   :  { %v567_v60 = vand.u32 2139095040, %v962_v58  ;;  %v965_v61 = vadd.f32 %v561_v57, %v543_v59  ;;  %v564_v62 = vand.u32 2147483647, %v962_v58  ;;  %vm566_vm15 = vcmp.lt.s32.totalorder %v962_v58, 0 }
 0x104   :  { %v568_v63 = vshrl.u32 %v567_v60, 23  ;;  %v671_v0 = vand.u32 2139095040, %v965_v61  ;;  %v571_v3 = vand.u32 8388607, %v564_v62  ;;  %v668_v4 = vand.u32 2147483647, %v965_v61 }
 0x105   :  { %vm1032_vm0 = vcmp.le.f32.partialorder %v564_v62, 0.7853982 }
 0x106   :  { %v800_v1 = vadd.s32 4294967169, %v568_v63  ;;  %v672_v2 = vshrl.u32 %v671_v0, 23  ;;  %v572_v8 = vor.u32 8388608, %v571_v3  ;;  %v675_v9 = vand.u32 8388607, %v668_v4 }
 0x108   :  { %v574_v5 = vadd.s32 1, %v800_v1  ;;  %v804_v6 = vadd.s32 4294967169, %v672_v2  ;;  %v974_v15 = vshll.u32 %v572_v8, 8  ;;  %v676_v16 = vor.u32 8388608, %v675_v9 }
 0x10a   :  { %vm575_vm1 = vcmp.gt.s32.totalorder %v574_v5, 0  ;;  %v678_v7 = vadd.s32 1, %v804_v6 }
 0x10b   :  { %v576_v10 = vsel %vm575_vm1, %v574_v5, 0  ;;  %v716_v5 = vshll.u32 %v676_v16, 8  ;;  %vm670_vm1 = vcmp.lt.s32.totalorder %v965_v61, 0 }
 0x10c   :  { %v577_v11 = vshrl.u32 %v576_v10, 5  ;;  %v578_v12 = vand.u32 31, %v576_v10  ;;  %vm679_vm2 = vcmp.gt.s32.totalorder %v678_v7, 0 }
 0x10d   :  { %v680_v13 = vsel %vm679_vm2, %v678_v7, 0  ;;  %vm669_vm2 = vcmp.le.f32.partialorder %v668_v4, 0.7853982 }
 0x10e   :  { %v579_v14 = vsub.s32 32, %v578_v12  ;;  %v590_v18 = vshll.u32 %v926_v17, %v578_v12  ;;  %v593_v20 = vshll.u32 %v927_v19, %v578_v12  ;;  %vm599_vm3 = vcmp.lt.s32.totalorder %v577_v11, 4 }
 0x10f   :  { %v682_v21 = vand.u32 31, %v680_v13  ;;  %v581_v26 = vshll.u32 %v929_v25, %v578_v12  ;;  %v977_v29 = vshrl.u32 %v680_v13, 5  ;;  %v584_v32 = vshll.u32 %v930_v27, %v578_v12 }
 0x110   :  { %v591_v22 = vshrl.u32 %v927_v19, %v579_v14  ;;  %v594_v24 = vshrl.u32 %v928_v23, %v579_v14  ;;  %v582_v28 = vshrl.u32 %v930_v27, %v579_v14  ;;  %v580_v31 = vshrl.u32 %v929_v25, %v579_v14 }
 0x111   :  { %v683_v30 = vsub.s32 32, %v682_v21  ;;  %v585_v37 = vshrl.u32 %v931_v36, %v579_v14  ;;  %v587_v40 = vshll.u32 %v931_v36, %v578_v12  ;;  %v588_v41 = vshrl.u32 %v926_v17, %v579_v14 }
 0x112   :  { %v592_v33 = vor.u32 %v591_v22, %v590_v18  ;;  %v595_v34 = vor.u32 %v594_v24, %v593_v20  ;;  %v583_v35 = vor.u32 %v582_v28, %v581_v26  ;;  %v694_v43 = vshll.u32 %v926_v17, %v682_v21 }
 0x113   :  { %v695_v38 = vshrl.u32 %v927_v19, %v683_v30  ;;  %v698_v39 = vshrl.u32 %v928_v23, %v683_v30  ;;  %v697_v44 = vshll.u32 %v927_v19, %v682_v21  ;;  %v586_v45 = vor.u32 %v585_v37, %v584_v32 }
 0x114   :  { %v605_v42 = vsel %vm599_vm3, %v592_v33, 920167782  ;;  %v609_v46 = vsel %vm599_vm3, %v595_v34, 1326507024  ;;  %vm703_vm4 = vcmp.lt.s32.totalorder %v977_v29, 4  ;;  %v589_v47 = vor.u32 %v588_v41, %v587_v40 }
 0x115   :  { %vm596_vm5 = vcmp.lt.s32.totalorder %v577_v11, 1  ;;  %v699_v48 = vor.u32 %v698_v39, %v697_v44  ;;  %vm598_vm6 = vcmp.lt.s32.totalorder %v577_v11, 3  ;;  %v696_v51 = vor.u32 %v695_v38, %v694_v43 }
 0x116   :  { %v600_v49 = vsel %vm596_vm5, %v580_v31, %v583_v35  ;;  %v604_v50 = vsel %vm596_vm5, %v583_v35, %v586_v45  ;;  %vm597_vm7 = vcmp.lt.s32.totalorder %v577_v11, 2  ;;  %v601_v52 = vsel %vm599_vm3, %v589_v47, 2102212464 }
 0x117   :  { %v606_v53 = vsel %vm598_vm6, %v589_v47, %v605_v42  ;;  %v602_v54 = vsel %vm598_vm6, %v586_v45, %v601_v52  ;;  %v608_v56 = vsel %vm596_vm5, %v586_v45, %v589_v47  ;;  %v610_v57 = vsel %vm598_vm6, %v592_v33, %v609_v46 }
 0x118   :  { %v607_v55 = vsel %vm597_vm7, %v604_v50, %v606_v53  ;;  %v603_v59 = vsel %vm597_vm7, %v600_v49, %v602_v54  ;;  %v611_v60 = vsel %vm597_vm7, %v608_v56, %v610_v57  ;;  %v713_v1 = vsel %vm703_vm4, %v699_v48, 1326507024 }
 0x119   :  { %v985_v63 = vmul.u32.u64.low %v974_v15, %v607_v55  ;;  %v986_v0 = vmul.u32.u64.high %v974_v15, %v607_v55, %v985_v63  ;;  %v991_v2 = vmul.u32.u64.low %v974_v15, %v611_v60  ;;  %v992_v3 = vmul.u32.u64.high %v974_v15, %v611_v60, %v991_v2 }
 0x11a   :  { %v685_v6 = vshll.u32 %v929_v25, %v682_v21  ;;  %v686_v7 = vshrl.u32 %v930_v27, %v683_v30  ;;  %v688_v8 = vshll.u32 %v930_v27, %v682_v21  ;;  %v689_v9 = vshrl.u32 %v931_v36, %v683_v30 }
 0x11b   :  { %v709_v10 = vsel %vm703_vm4, %v696_v51, 920167782  ;;  %v619_v11 = vmul.u32 %v974_v15, %v603_v59  ;;  %v691_v12 = vshll.u32 %v931_v36, %v682_v21  ;;  %v692_v13 = vshrl.u32 %v926_v17, %v683_v30 }
 0x11c   :  { %v622_v14 = vadd.s32 1, %v986_v0  ;;  %v687_v18 = vor.u32 %v686_v7, %v685_v6  ;;  %v690_v19 = vor.u32 %v689_v9, %v688_v8  ;;  %vm702_vm8 = vcmp.lt.s32.totalorder %v977_v29, 3 }
 0x11d   :  { %vm621_vm9 = vc.u32 %v992_v3, %v985_v63  ;;  %v693_v16 = vor.u32 %v692_v13, %v691_v12  ;;  %vm700_vm10 = vcmp.lt.s32.totalorder %v977_v29, 1  ;;  %v714_v20 = vsel %vm702_vm8, %v696_v51, %v713_v1 }
 0x11e   :  { %v623_v22 = vsel %vm621_vm9, %v622_v14, %v986_v0  ;;  %v684_v15 = vshrl.u32 %v929_v25, %v683_v30  ;;  %vm701_vm11 = vcmp.lt.s32.totalorder %v977_v29, 2  ;;  %v708_v17 = vsel %vm700_vm10, %v687_v18, %v690_v19 }
 0x11f   :  { %v624_v21 = vadd.s32 %v623_v22, %v619_v11  ;;  %v705_v23 = vsel %vm703_vm4, %v693_v16, 2102212464  ;;  %v710_v24 = vsel %vm702_vm8, %v693_v16, %v709_v10  ;;  %v712_v26 = vsel %vm700_vm10, %v690_v19, %v693_v16 }
 0x120   :  { %v704_v27 = vsel %vm700_vm10, %v684_v15, %v687_v18  ;;  %v711_v28 = vsel %vm701_vm11, %v708_v17, %v710_v24  ;;  %v715_v31 = vsel %vm701_vm11, %v712_v26, %v714_v20  ;;  %v706_v33 = vsel %vm702_vm8, %v690_v19, %v705_v23 }
 0x121   :  { %v625_v32 = vadd.s32 536870912, %v624_v21  ;;  %v1013_v34 = vmul.u32.u64.low %v716_v5, %v715_v31  ;;  %v1014_v25 = vmul.u32.u64.high %v716_v5, %v715_v31, %v1013_v34  ;;  %v707_v37 = vsel %vm701_vm11, %v704_v27, %v706_v33 }
 0x122   :  { %v1016_v30 = vmul.u32.u64.low %v716_v5, %v711_v28  ;;  %v1017_v35 = vmul.u32.u64.high %v716_v5, %v711_v28, %v1016_v30  ;;  %v723_v41 = vmul.u32 %v716_v5, %v707_v37  ;;  %v620_v52 = vadd.s32 %v985_v63, %v992_v3 }
 0x123   :  { %v1019_v36 = vshrl.u32 %v625_v32, 30  ;;  %vm656_vm9 = vweird.f32 %v962_v58  ;;  %vm760_vm10 = vweird.f32 %v965_v61 }
 0x124   :  { %vm725_vm12 = vc.u32 %v1014_v25, %v1016_v30  ;;  %v726_v39 = vadd.s32 1, %v1017_v35  ;;  %v724_v11 = vadd.s32 %v1016_v30, %v1014_v25 }
 0x125   :  { %v627_v38 = vshll.u32 %v1019_v36, 30  ;;  %v650_v24 = vsub.s32 4, %v1019_v36 }
 0x126   :  { %v727_v29 = vsel %vm725_vm12, %v726_v39, %v1017_v35 }
 0x127   :  { %v628_v40 = vsub.s32 %v624_v21, %v627_v38  ;;  %v728_v43 = vadd.s32 %v727_v29, %v723_v41  ;;  %v651_v28 = vsel %vm566_vm15, %v650_v24, %v1019_v36 }
 0x128   :  { %v653_v33 = vsel %vm1032_vm0, 0, %v651_v28 }
 0x129   :  { %v630_v42 = vsub.s32 0, %v628_v40  ;;  %v729_v45 = vadd.s32 536870912, %v728_v43  ;;  %v657_v25 = vadd.s32 3, %v653_v33 }
 0x12b   :  { %v801_v44 = vmin.u32 %v630_v42, %v628_v40  ;;  %v730_v47 = vshrl.u32 %v729_v45, 30  ;;  %v658_v39 = vand.u32 3, %v657_v25 }
 0x12d   :  { %v632_v46 = vclz %v801_v44  ;;  %v731_v49 = vshll.u32 %v730_v47, 30  ;;  %v754_v62 = vsub.s32 4, %v730_v47  ;;  %vm660_vm3 = vcmp.eq.s32.totalorder %v658_v39, 0 }
 0x12e   :  { %vm663_vm4 = vcmp.eq.s32.totalorder %v658_v39, 2  ;;  %vm659_vm5 = vcmp.lt.s32.totalorder %v658_v39, 2 }
 0x12f   :  { %v802_v48 = vadd.s32 4294967294, %v632_v46  ;;  %v732_v51 = vsub.s32 %v728_v43, %v731_v49  ;;  %v755_v34 = vsel %vm670_vm1, %v754_v62, %v730_v47 }
 0x130   :  { %v757_v30 = vsel %vm669_vm2, 0, %v755_v34 }
 0x131   :  { %vm803_vm13 = vcmp.lt.s32.totalorder %v802_v48, 0  ;;  %v734_v55 = vsub.s32 0, %v732_v51  ;;  %v761_v38 = vadd.s32 3, %v757_v30 }
 0x132   :  { %v635_v50 = vsel %vm803_vm13, 0, %v802_v48 }
 0x133   :  { %v636_v53 = vsub.s32 32, %v635_v50  ;;  %v640_v54 = vsub.s32 4294967266, %v635_v50  ;;  %v637_v56 = vshll.u32 %v628_v40, %v635_v50  ;;  %v805_v60 = vmin.u32 %v734_v55, %v732_v51 }
 0x134   :  { %v762_v41 = vand.u32 3, %v761_v38 }
 0x135   :  { %v638_v57 = vshrl.u32 %v620_v52, %v636_v53  ;;  %v641_v59 = vadd.s32 127, %v640_v54  ;;  %v736_v2 = vclz %v805_v60 }
 0x136   :  { %vm767_vm6 = vcmp.eq.s32.totalorder %v762_v41, 2  ;;  %vm764_vm7 = vcmp.eq.s32.totalorder %v762_v41, 0  ;;  %vm763_vm8 = vcmp.lt.s32.totalorder %v762_v41, 2 }
 0x137   :  { %v639_v0 = vor.u32 %v638_v57, %v637_v56  ;;  %v642_v1 = vshll.u32 %v641_v59, 23  ;;  %v806_v6 = vadd.s32 4294967294, %v736_v2 }
 0x139   :  { %v643_v5 = vor.u32 4788187, %v642_v1  ;;  %v646_v8 = vcvt.s32.f32 %v639_v0  ;;  %vm807_vm14 = vcmp.lt.s32.totalorder %v806_v6, 0 }
 0x13a   :  { %v739_v10 = vsel %vm807_vm14, 0, %v806_v6 }
 0x13b   :  { %v644_v7 = vand.u32 2147483647, %v643_v5  ;;  %v740_v63 = vsub.s32 32, %v739_v10  ;;  %v744_v3 = vsub.s32 4294967266, %v739_v10  ;;  %v741_v13 = vshll.u32 %v732_v51, %v739_v10 }
 0x13d   :  { %v647_v9 = vmul.f32 %v646_v8, %v644_v7  ;;  %v742_v14 = vshrl.u32 %v724_v11, %v740_v63  ;;  %v745_v18 = vadd.s32 127, %v744_v3 }
 0x13f   :  { %v648_v12 = vxor.u32 2147483648, %v647_v9  ;;  %v743_v20 = vor.u32 %v742_v14, %v741_v13  ;;  %v746_v22 = vshll.u32 %v745_v18, 23 }
 0x141   :  { %v649_v19 = vsel %vm566_vm15, %v648_v12, %v647_v9  ;;  %v747_v17 = vor.u32 4788187, %v746_v22  ;;  %v750_v23 = vcvt.s32.f32 %v743_v20 }
 0x142   :  { %v652_v15 = vsel %vm1032_vm0, %v962_v58, %v649_v19 }
 0x143   :  { %828 = vcosq.f32 %v652_v15  ;;  %v748_v21 = vand.u32 2147483647, %v747_v17 }
 0x144   :  { %830 = vsinq.f32 %v652_v15 }
 0x145   :  { %v751_v26 = vmul.f32 %v750_v23, %v748_v21 }
 0x147   :  { %v752_v27 = vxor.u32 2147483648, %v751_v26 }
 0x149   :  { %v753_v31 = vsel %vm670_vm1, %v752_v27, %v751_v26 }
 0x14a   :  { %v756_v32 = vsel %vm669_vm2, %v965_v61, %v753_v31 }
 0x14b   :  { %832 = vcosq.f32 %v756_v32 }
 0x14c   :  { %834 = vsinq.f32 %v756_v32 }
 0x150   :  { %v829_v35 = vpop.eup %828 }
 0x151   :  { %v831_v37 = vpop.eup %830  ;;  %v664_v36 = vxor.u32 2147483648, %v829_v35 }
 0x152   :  { %v661_v40 = vxor.u32 2147483648, %v831_v37 }
 0x153   :  { %v665_v42 = vsel %vm663_vm4, %v664_v36, %v831_v37 }
 0x154   :  { %v662_v29 = vsel %vm660_vm3, %v829_v35, %v661_v40 }
 0x155   :  { %v666_v46 = vsel %vm659_vm5, %v662_v29, %v665_v42 }
 0x156   :  { %v667_v50 = vsel %vm656_vm9, nan, %v666_v46 }
 0x158   :  { %v833_v4 = vpop.eup %832 }
 0x159   :  { %v835_v43 = vpop.eup %834  ;;  %v768_v44 = vxor.u32 2147483648, %v833_v4 }
 0x15a   :  { %v765_v45 = vxor.u32 2147483648, %v835_v43 }
 0x15b   :  { %v769_v47 = vsel %vm767_vm6, %v768_v44, %v835_v43 }
 0x15c   :  { %v766_v48 = vsel %vm764_vm7, %v833_v4, %v765_v45 }
 0x15d   :  { %v770_v49 = vsel %vm763_vm8, %v766_v48, %v769_v47 }
 0x15e   :  { %v771_v51 = vsel %vm760_vm10, nan, %v770_v49 }
 0x15f   :  { %v774_v52 = vcombine.low %v667_v50, %v771_v51 }
 0x161   :  { %808 = vst.sshfl [vmem:[#allocation8] sm:$0x33 pattern:$0x76325410] %v774_v52 }
 0x162   :  { %907 = shalt.err (!%p904_p5)
}
 0x163   :  { %793 = dma.vmem_to_hbm [thread:$0]  %s791_s2, 64, %s1057_s3, [#allocation4]  }
 0x164   :  { %920 = dma.done.wait [#allocation4], 64  }
 0x165   :  { %921 = vsyncadd [#allocation4], 4294967232 }
 0x166   :  { %797 = vsyncpa [#allocation3], 1 }
 0x167   :  { %798 = vsyncpa [#allocation6], 1 }
 0x168   :  { %799 = vsyncpa [#allocation4], 1 }

</bundles_post_ra>
